<compile_context>
chip_gen: v7x
topology: tpu7x:2x2x1
jax: 0.10.0
libtpu: 0.0.40
codegen_flags: <defaults>
</compile_context>

<pallas_src>
import functools

import jax
import jax.numpy as jnp
from jax.experimental import pallas as pl
from jax.experimental.pallas import tpu as pltpu


def layernorm_kernel(x_ref, g_ref, o_ref, *, eps, inv_c):
    # x_ref: (bk, C, tn) -- channels on sublanes, spatial positions on lanes.
    # g_ref: (C, 1)      -- per-channel scale, broadcast over batch & lanes.
    x = x_ref[...].astype(jnp.float32)            # f32 stats even for bf16/f16
    g = g_ref[...].astype(jnp.float32)
    mean = jnp.sum(x, axis=1, keepdims=True) * inv_c        # (bk, 1, tn)
    xc = x - mean
    var = jnp.sum(xc * xc, axis=1, keepdims=True) * inv_c   # (bk, 1, tn)
    inv = jax.lax.rsqrt(var + eps)                          # EUP slot
    o_ref[...] = (xc * inv * g[None]).astype(o_ref.dtype)


def _vmem_cap_bytes():
    """Generation-aware scoped-VMEM ceiling (~3/4 of physical, <= 96 MiB)."""
    try:
        phys = int(pltpu.get_tpu_info().vmem_capacity_bytes)
    except Exception:
        phys = 64 * 1024 * 1024      # conservative fallback: v7x-sized VMEM
    return min((phys * 3) // 4, 96 * 1024 * 1024)


def _choose_tiling(B, C, Np, itemsize, vmem_cap):
    """Pick (bk, tn) for blocks of shape (bk, C, tn).

    tn is a multiple-of-128 divisor of Np.  Maximizes per-step payload
    (amortizing the ~0.35 us fixed grid-step cost) subject to a VMEM-derived
    per-tile ceiling, preferring >= 2 total grid steps (v7x megacore); ties
    prefer the wider, lane-dense tile.
    """
    # Per step: in+out tiles double-buffered (4x) + ~3 f32 working tiles + slack.
    denom = 4 + (12 // itemsize) + 2
    max_tile = min(vmem_cap // denom, 8 * 1024 * 1024)

    tns = [t for t in range(128, Np + 1, 128) if Np % t == 0]
    bks = [b for b in range(1, B + 1) if B % b == 0]

    best = (1, 128)                      # safe fallback
    best_score = (-1, -1, -1)
    for tn in tns:
        for bk in bks:
            tile = bk * C * tn * itemsize
            if tile > max_tile:
                continue
            steps = (B // bk) * (Np // tn)
            score = (1 if steps >= 2 else 0, tile, tn)
            if score > best_score:
                best_score = score
                best = (bk, tn)
    return best


def layernorm_pallas(x_nchw, g):
    """Channel LayerNorm of the PyTorch module, as a single Pallas kernel."""
    B, C, H, W = x_nchw.shape
    N = H * W
    eps = 1e-5 if x_nchw.dtype == jnp.float32 else 1e-3   # matches the module
    itemsize = jnp.dtype(x_nchw.dtype).itemsize

    # NCHW -> (B, C, N): pure reshape, no data movement.
    x = x_nchw.reshape(B, C, N)

    # Prefer a tn that divides N exactly (no pad/slice HBM passes); pad only
    # as a fallback when N is not a multiple of 128.
    Np = N if N % 128 == 0 else ((N + 127) // 128) * 128
    vmem_cap = _vmem_cap_bytes()
    bk, tn = _choose_tiling(B, C, Np, itemsize, vmem_cap)
    if Np != N:
        # Padded columns are normalized independently (per spatial position),
        # so they never contaminate real columns; sliced off afterwards.
        x = jnp.pad(x, ((0, 0), (0, 0), (0, Np - N)))

    g2 = g.reshape(C, 1).astype(jnp.float32)

    kernel = functools.partial(layernorm_kernel, eps=eps, inv_c=1.0 / C)

    # Scoped-VMEM budget from actual tile sizes: in+out tiles double-buffered
    # (input dtype) + ~3 f32 working tiles + the tiny g buffer, with slack,
    # clamped to the generation-aware cap.
    tile_bytes = bk * C * tn * itemsize
    tile_f32 = bk * C * tn * 4
    needed = 4 * tile_bytes + 3 * tile_f32 + 2 * max(C, 8) * 128 * 4
    vmem_limit = min(vmem_cap, max(2 * needed, 32 * 1024 * 1024))

    out = pl.pallas_call(
        kernel,
        out_shape=jax.ShapeDtypeStruct((B, C, Np), x.dtype),
        grid_spec=pltpu.PrefetchScalarGridSpec(
            num_scalar_prefetch=0,
            grid=(B // bk, Np // tn),
            in_specs=[
                pl.BlockSpec((bk, C, tn), lambda b, n: (b, 0, n)),
                pl.BlockSpec((C, 1), lambda b, n: (0, 0)),
            ],
            out_specs=pl.BlockSpec((bk, C, tn), lambda b, n: (b, 0, n)),
        ),
        compiler_params=pltpu.CompilerParams(
            dimension_semantics=("parallel", "parallel"),
            vmem_limit_bytes=vmem_limit,
        ),
    )(x, g2)

    if Np != N:
        out = out[:, :, :N]
    return out.reshape(B, C, H, W)


def prenorm_pallas(x_nchw, g, fn=None):
    """PreNorm.forward: fn(norm(x)).  The norm runs in Pallas; `fn` is the
    arbitrary wrapped module and is applied afterwards as a plain callable."""
    y = layernorm_pallas(x_nchw, g)
    if fn is None:
        # TODO(synk): PreNorm wraps an arbitrary `fn` module; identity here.
        return y
    return fn(y)


def prenorm_ref(x, g, fn=None):
    """Pure-JAX reference mirroring the PyTorch forward exactly."""
    eps = 1e-5 if x.dtype == jnp.float32 else 1e-3
    mean = jnp.mean(x, axis=1, keepdims=True)
    var = jnp.mean((x - mean) ** 2, axis=1, keepdims=True)   # unbiased=False
    y = (x - mean) * jax.lax.rsqrt(var + eps) * g.reshape(1, -1, 1, 1)
    return y if fn is None else fn(y)


if __name__ == "__main__":
    key = jax.random.PRNGKey(0)
    k1, k2, k3, k4 = jax.random.split(key, 4)

    # Small demo shape matching the module's NCHW usage.
    B, C, H, W = 2, 4, 16, 16
    x = jax.random.normal(k1, (B, C, H, W), jnp.float32)
    # PyTorch inits g to ones; perturb it so the scale path is exercised.
    g = 1.0 + 0.1 * jax.random.normal(k2, (1, C, 1, 1), jnp.float32)
    out = jax.block_until_ready(prenorm_pallas(x, g))
    ref = prenorm_ref(x, g)
    assert out.shape == (B, C, H, W)
    assert jnp.allclose(out, ref, atol=1e-4, rtol=1e-4), "mismatch (small shape)"

    # Slightly larger shape to exercise batch-blocking / spatial tiling.
    B2, C2, H2, W2 = 2, 64, 32, 32
    x2 = jax.random.normal(k3, (B2, C2, H2, W2), jnp.float32)
    g2 = 1.0 + 0.1 * jax.random.normal(k4, (1, C2, 1, 1), jnp.float32)
    out2 = jax.block_until_ready(prenorm_pallas(x2, g2))
    ref2 = prenorm_ref(x2, g2)
    assert jnp.allclose(out2, ref2, atol=1e-4, rtol=1e-4), "mismatch (large shape)"

    print("KERNEL_OK")
</pallas_src>

<mosaic_0001>
module attributes {stable_mosaic.version = 11 : i64} {
  func.func @layernorm_kernel(%arg0: i32, %arg1: i32, %arg2: memref<1x4x256xf32, #tpu.memory_space<vmem>>, %arg3: memref<4x1xf32, #tpu.memory_space<vmem>>, %arg4: memref<1x4x256xf32, #tpu.memory_space<vmem>>) attributes {dimension_semantics = [#tpu.dimension_semantics<parallel>, #tpu.dimension_semantics<parallel>], iteration_bounds = array<i64: 2, 1>, scalar_prefetch = 0 : i64, scratch_operands = 0 : i64, tpu.core_type = #tpu.core_type<tc>, window_params = [{transform_indices = @transform_0, window_bounds = array<i64: 1, 4, 256>}, {pipeline_mode = #tpu.pipeline_mode<synchronous>, transform_indices = @transform_1, window_bounds = array<i64: 4, 1>}, {transform_indices = @transform_2, window_bounds = array<i64: 1, 4, 256>}]} {
    %c0 = arith.constant 0 : index
    %c0_0 = arith.constant 0 : index
    %c0_1 = arith.constant 0 : index
    %0 = vector.load %arg2[%c0, %c0_0, %c0_1] : memref<1x4x256xf32, #tpu.memory_space<vmem>>, vector<1x4x256xf32>
    %c0_2 = arith.constant 0 : index
    %c0_3 = arith.constant 0 : index
    %1 = vector.load %arg3[%c0_2, %c0_3] : memref<4x1xf32, #tpu.memory_space<vmem>>, vector<4x1xf32>
    %cst = arith.constant dense<0.000000e+00> : vector<1x256xf32>
    %2 = vector.multi_reduction <add>, %0, %cst [1] : vector<1x4x256xf32> to vector<1x256xf32>
    %3 = vector.shape_cast %2 : vector<1x256xf32> to vector<1x1x256xf32>
    %cst_4 = arith.constant 2.500000e-01 : f32
    %4 = vector.broadcast %cst_4 : f32 to vector<1x1x256xf32>
    %5 = arith.mulf %3, %4 : vector<1x1x256xf32>
    %6 = vector.broadcast %5 : vector<1x1x256xf32> to vector<1x4x256xf32>
    %7 = arith.subf %0, %6 : vector<1x4x256xf32>
    %8 = arith.mulf %7, %7 : vector<1x4x256xf32>
    %cst_5 = arith.constant dense<0.000000e+00> : vector<1x256xf32>
    %9 = vector.multi_reduction <add>, %8, %cst_5 [1] : vector<1x4x256xf32> to vector<1x256xf32>
    %10 = vector.shape_cast %9 : vector<1x256xf32> to vector<1x1x256xf32>
    %cst_6 = arith.constant 2.500000e-01 : f32
    %11 = vector.broadcast %cst_6 : f32 to vector<1x1x256xf32>
    %12 = arith.mulf %10, %11 : vector<1x1x256xf32>
    %cst_7 = arith.constant 9.99999974E-6 : f32
    %13 = vector.broadcast %cst_7 : f32 to vector<1x1x256xf32>
    %14 = arith.addf %12, %13 : vector<1x1x256xf32>
    %15 = math.rsqrt %14 : vector<1x1x256xf32>
    %16 = vector.broadcast %15 : vector<1x1x256xf32> to vector<1x4x256xf32>
    %17 = arith.mulf %7, %16 : vector<1x4x256xf32>
    %18 = vector.shape_cast %1 : vector<4x1xf32> to vector<1x4x1xf32>
    %19 = vector.broadcast %18 : vector<1x4x1xf32> to vector<1x4x256xf32>
    %20 = arith.mulf %17, %19 : vector<1x4x256xf32>
    %c0_8 = arith.constant 0 : index
    %c0_9 = arith.constant 0 : index
    %c0_10 = arith.constant 0 : index
    %21 = vector.load %arg4[%c0_8, %c0_9, %c0_10] : memref<1x4x256xf32, #tpu.memory_space<vmem>>, vector<1x4x256xf32>
    tpu.vector_store %arg4[%c0_8, %c0_9, %c0_10], %20 {strides = array<i32>} : memref<1x4x256xf32, #tpu.memory_space<vmem>>, vector<1x4x256xf32>,
    return
  }
  func.func @transform_0(%arg0: i32, %arg1: i32) -> (i32, i32, i32) {
    %c0_i32 = arith.constant 0 : i32
    %c0_i32_0 = arith.constant 0 : i32
    return %arg0, %c0_i32, %arg1 : i32, i32, i32
  }
  func.func @transform_1(%arg0: i32, %arg1: i32) -> (i32, i32) {
    %c0_i32 = arith.constant 0 : i32
    %c0_i32_0 = arith.constant 0 : i32
    %c0_i32_1 = arith.constant 0 : i32
    return %c0_i32, %c0_i32_0 : i32, i32
  }
  func.func @transform_2(%arg0: i32, %arg1: i32) -> (i32, i32, i32) {
    %c0_i32 = arith.constant 0 : i32
    %c0_i32_0 = arith.constant 0 : i32
    return %arg0, %c0_i32, %arg1 : i32, i32, i32
  }
}

</mosaic_0001>

<bundles_post_ra>
// kernel: tpu_custom_call.1
= control target key start
LH: loop header
LB: loop body
LE: loop exit
PB: predicated region body
PF: predicated region fallthrough
CT: control target
= control target key end

     0   :  { %7 = vsyncpa [#allocation3], 0  ;;  %s754_s0 = inlined_call_operand.hbm [shape: f32[2,4,256], index: 0, kind: input, shape index: {}]   ;;  %s755_s1 = inlined_call_operand.vmem [shape: f32[4,1], index: 1, kind: input, shape index: {}]   ;;  %s756_s2 = inlined_call_operand.hbm [shape: f32[2,4,256], index: 2, kind: output, shape index: {}]  }
   0x1   :  { %9 = vsyncpa [#allocation3 + $0x1], 0 }
   0x2   :  { %10 = vsyncpa [#allocation4], 0 }
   0x3   :  { %12 = vsyncpa [#allocation4 + $0x1], 0  ;;  %s571_s9 = smov 0   ;;  %s573_s10 = smov 0  }
   0x4   :  { %s575_s11 = smov 0   ;;  %s577_s12 = smov 0  }
   0x5   :  { %s579_s13 = smov 0   ;;  %s581_s14 = smov 0  }
   0x6 LB: > { %s351_s15 = sadd.s32 4294967295, %s550_s14   ;;  %s352_s16 = sadd.s32 4294967294, %s550_s14   ;;  %s550_s14 = sphi %s581_s14, %s18_s14   ;;  %s546_s13 = sphi %s579_s13, %s772_s13   ;;  %s542_s12 = sphi %s577_s12, %s771_s12   ;;  %s538_s11 = sphi %s575_s11, %s770_s11   ;;  %s534_s10 = sphi %s573_s10, %s769_s10   ;;  %s530_s9 = sphi %s571_s9, %s768_s9  }
   0x7   : > { %s30_s17 = sadd.s32 1, %s546_s13  ;;  %s39_s18 = sadd.s32 1, %s538_s11 }
   0x8   : > { %p32_p0 = scmp.ge.s32.totalorder %s30_s17, 2  ;;  %p46_p1 = scmp.ne.s32.totalorder %s538_s11, %s534_s10 }
   0x9   : > { %p47_p2 = scmp.eq.s32.totalorder %s550_s14, 0  ;;  %p52_p3 = scmp.ne.s32.totalorder %s534_s10, %s530_s9 }
   0xa   : > { %s774_s17 = smov (%p32_p0, %s30_s17), 0  ;;  %p53_p5 = scmp.eq.s32.totalorder %s351_s15, 0 }
   0xb   : > { %p612_p4 = por %p47_p2, %p46_p1  ;;  %s34_s20 = ssub.s32 %s546_s13, %s774_s17 }
   0xc   : > { %p99_p6 = scmp.eq.s32.totalorder %s351_s15, 1  ;;  %p37_p7 = scmp.eq.s32.totalorder %s34_s20, 0 }
   0xd   : > { %p618_p8 = por %p53_p5, %p52_p3  ;;  %p105_p10 = scmp.eq.s32.totalorder %s352_s16, 1 }
   0xe   : > { %p622_p9 = por %p99_p6, %p46_p1  ;;  %p380_p13 = scmp.lt.s32.totalorder %s550_s14, 2 }
   0xf   : > { %s627_s23 = scalar_select %p37_p7, %s538_s11, %s39_s18  }
  0x10   : > { %s760_s22 = scalar_select %p622_p9, 1, 0 }
  0x11   : > { %p629_p11 = por %p105_p10, %p52_p3  ;;  %s128_s25 = sand.u32 1, %s538_s11  }
  0x12   : > { %s355_s26 = sshll.u32 %s128_s25, 3  ;;  %s366_s27 = sshll.u32 %s546_s13, 7 }
  0x13   : > { %s761_s24 = scalar_select %p629_p11, 1, 0 }
  0x14   : > { %s640_s30 = scalar_lea.hbm %s754_s0, %s366_s27  ;;  %s132_s3 = scalar_lea.vmem [#allocation2], %s355_s26 }
  0x15   : > { %s142_s4 = sshll.u32 %s132_s3, 4  ;;  %p646_p0 = pnand %p380_p13, %p612_p4  ;;  %s642_s4 = int_to_ptr.vmem [resolvable:$true] %s142_s4 }
  0x16   : > { %s129_s6 = scalar_lea.sflag [#allocation3], %s128_s25  ;;  %s438_s7 = scalar_lea.hbm %s640_s30, 128 }
  0x17   : > { %p439_p3 = scmp.ne.s32.totalorder %s640_s30, %s438_s7  ;;  %p440_p5 = pneg %p646_p0 }
  0x18   : > { %s443_s16 = scalar_lea.hbm %s754_s0, 256  ;;  %p444_p4 = scmp.lt.u32.totalorder %s640_s30, %s754_s0 }
  0x19   : > { %p441_p6 = pnand %p440_p5, %p439_p3  ;;  %p445_p10 = scmp.lt.u32.totalorder %s443_s16, %s438_s7 }
  0x1a   : > { %p447_p12 = scmp.lt.u32.totalorder %s438_s7, %s640_s30 }
  0x1b   : > { %p442_p7 = pneg %p441_p6  ;;  %p446_p13 = por %p445_p10, %p444_p4 }
  0x1d   : > { %p448_p1 = por %p447_p12, %p446_p13 }
  0x1f   : > { %p449_p2 = pnand %p448_p1, %p442_p7 }
  0x21   : > { %452 = shalt.err (!%p449_p2)
}
  0x22   : > { %s453_s20 = scalar_lea.vmem %s642_s4, 128  ;;  %s552_s25 = smov [#allocation2]  }
  0x23   : > { %p454_p3 = scmp.ne.s32.totalorder %s642_s4, %s453_s20  ;;  %s458_s26 = sshll.u32 %s552_s25, 4  ;;  %s459_s26 = int_to_ptr.vmem [resolvable:$false] %s458_s26 }
  0x24   : > { %s460_s27 = scalar_lea.vmem %s459_s26, 256  ;;  %p461_p9 = scmp.lt.s32.totalorder %s642_s4, %s459_s26 }
  0x25   : > { %p456_p6 = pnand %p454_p3, %p440_p5  ;;  %p462_p4 = scmp.lt.s32.totalorder %s460_s27, %s453_s20 }
  0x27   : > { %p457_p11 = pneg %p456_p6  ;;  %p463_p10 = por %p462_p4, %p461_p9 }
  0x29   : > { %p464_p12 = pnand %p463_p10, %p457_p11 }
  0x2b   : > { %467 = shalt.err (!%p464_p12)
}
  0x2c   : > { %375 = dma.hbm_to_vmem [thread:$0]  (!%p646_p0), %s640_s30, 128, %s642_s4, %s129_s6  }
  0x2d   : > { %p763_p1 = scmp.lt.s32.totalorder %s550_s14, 3  ;;  %p764_p2 = scmp.ge.s32.totalorder %s550_s14, 1 }
  0x2f   : > { %p148_p5 = pnand %p764_p2, %p763_p1 }
  0x30   : > { %s682_s28 = sand.u32 (!%p148_p5), 1, %s534_s10  }
  0x31   : > { %151 = sbr.rel (%p148_p5) target bundleno = 205 (0xcd), region = 28  ;;  %s359_s29 = sshll.u32 (!%p148_p5), %s682_s28, 3 }
  0x32   : > { %s154_s3 = scalar_lea.sflag (!%p148_p5), [#allocation3], %s682_s28  ;;  %s157_s5 = scalar_lea.vmem (!%p148_p5), [#allocation2], %s359_s29 }
  0x38   : > { %521 = dma.done.wait (%p618_p8), %s154_s3, 128  }
  0x39   : > { %523 = vsyncadd (%p618_p8), %s154_s3, 4294967168  ;;  %v553_v0 = vmov 0   ;;  %v181_v1 = vld [vmem:[%s755_s1] sm:$0xf]  ;;  %vm185_vm0 = vcmask 1043456   ;;  %v243_v44 = vlaneseq  ;;  %s367_s21 = sshll.u32 %s542_s12, 7 }
  0x3a   : > { %432 = vset.pattern.permute.xlu0 %v553_v0  ;;  %v180_v2 = vld [vmem:[%s157_s5] sm:$0xff]  ;;  %v554_v42 = vmov 839922192   ;;  %s177_s6 = scalar_lea.vmem [#allocation5], %s359_s29  ;;  %s705_s16 = scalar_lea.hbm %s756_s2, %s367_s21 }
  0x3b   : > { %238 = vperm.xlu0 %432, %v181_v1   ;;  %v183_v3 = vcombine.high %v180_v2, %v180_v2  ;;  %v186_v4 = vsel %vm185_vm0, %v180_v2, 0.0  ;;  %v241_v43 = vunpack.c.l.s4 %v554_v42  ;;  %v244_v48 = vshrl.u32 %v243_v44, 7  ;;  %s267_s7 = sshll.u32 %s177_s6, 4  ;;  %s251_s18 = scalar_lea.sflag [#allocation4], %s682_s28  ;;  %s707_s7 = int_to_ptr.vmem [resolvable:$true] %s267_s7 }
  0x3c   : > { %v187_v6 = vrot.slane %v186_v4, 4  ;;  %s468_s19 = scalar_lea.vmem %s707_s7, 128  ;;  %p765_p9 = scmp.ne.s32.totalorder %s760_s22, 0 }
  0x3d   : > { %v193_v5 = vsel %vm185_vm0, %v183_v3, 0.0  ;;  %v242_v47 = vunpack.c.0.s8 %v241_v43  ;;  %p469_p8 = scmp.ne.s32.totalorder %s707_s7, %s468_s19  ;;  %s555_s12 = smov [#allocation5]  }
  0x3e   : > { %v194_v7 = vrot.slane %v193_v5, 4  ;;  %v188_v8 = vadd.f32 %v187_v6, %v186_v4  ;;  %s472_s20 = sshll.u32 %s555_s12, 4  ;;  %s473_s20 = int_to_ptr.vmem [resolvable:$false] %s472_s20 }
  0x3f   : > { %v245_v50 = vsub.s32 %v242_v47, %v244_v48  ;;  %p470_p11 = pnand %p469_p8, %p765_p9  ;;  %s474_s25 = scalar_lea.vmem %s473_s20, 256 }
  0x40   : > { %v195_v9 = vadd.f32 %v194_v7, %v193_v5  ;;  %v189_v10 = vrot.slane %v188_v8, 2  ;;  %p475_p7 = scmp.lt.s32.totalorder %s707_s7, %s473_s20  ;;  %p476_p13 = scmp.lt.s32.totalorder %s474_s25, %s468_s19 }
  0x41   : > { %p471_p0 = pneg %p470_p11 }
  0x42   : > { %v196_v11 = vrot.slane %v195_v9, 2  ;;  %v190_v12 = vadd.f32 %v189_v10, %v188_v8  ;;  %p477_p3 = por %p476_p13, %p475_p7 }
  0x44   : > { %v197_v13 = vadd.f32 %v196_v11, %v195_v9  ;;  %v191_v14 = vrot.slane %v190_v12, 1  ;;  %p478_p6 = pnand %p477_p3, %p471_p0 }
  0x46   : > { %v198_v15 = vrot.slane %v197_v13, 1  ;;  %v192_v16 = vadd.f32 %v191_v14, %v190_v12 }
  0x48   : > { %v199_v17 = vadd.f32 %v198_v15, %v197_v13  ;;  %v200_v18 = vmul.f32 0.25, %v192_v16 }
  0x4a   : > { %v201_v19 = vmul.f32 0.25, %v199_v17 }
  0x4c   : > { %v204_v20 = vcombine.low %v200_v18, %v201_v19 }
  0x4e   : > { %v206_v21 = vsub.f32 %v180_v2, %v204_v20 }
  0x50   : > { %v207_v22 = vmul.f32 %v206_v21, %v206_v21 }
  0x52   : > { %v209_v23 = vcombine.high %v207_v22, %v207_v22  ;;  %v211_v24 = vsel %vm185_vm0, %v207_v22, 0.0 }
  0x53   : > { %v212_v26 = vrot.slane %v211_v24, 4 }
  0x54   : > { %v218_v25 = vsel %vm185_vm0, %v209_v23, 0.0 }
  0x55   : > { %v219_v27 = vrot.slane %v218_v25, 4  ;;  %v213_v28 = vadd.f32 %v212_v26, %v211_v24 }
  0x57   : > { %v220_v29 = vadd.f32 %v219_v27, %v218_v25  ;;  %v214_v30 = vrot.slane %v213_v28, 2 }
  0x59   : > { %v221_v31 = vrot.slane %v220_v29, 2  ;;  %v215_v32 = vadd.f32 %v214_v30, %v213_v28 }
  0x5b   : > { %v222_v33 = vadd.f32 %v221_v31, %v220_v29  ;;  %v216_v34 = vrot.slane %v215_v32, 1 }
  0x5d   : > { %v223_v35 = vrot.slane %v222_v33, 1  ;;  %v217_v36 = vadd.f32 %v216_v34, %v215_v32 }
  0x5f   : > { %v224_v37 = vadd.f32 %v223_v35, %v222_v33  ;;  %v225_v38 = vmul.f32 0.25, %v217_v36 }
  0x61   : > { %v226_v39 = vmul.f32 0.25, %v224_v37  ;;  %v227_v40 = vadd.f32 1e-05, %v225_v38 }
  0x63   : > { %v228_v41 = vadd.f32 1e-05, %v226_v39  ;;  %434 = vrsqrt.f32 %v227_v40 }
  0x65   : > { %436 = vrsqrt.f32 %v228_v41 }
  0x6d   : > { %v435_v45 = vpop.eup %434 }
  0x6f   : > { %v437_v46 = vpop.eup %436 }
  0x70   : > { %v233_v49 = vcombine.low %v435_v45, %v437_v46 }
  0x72   : > { %v235_v51 = vmul.f32 %v233_v49, %v206_v21 }
  0xba   : > { %v239_v52 = vpop.permute.xlu0 %238 }
  0xbb   : > { %v246_v53 = vrot.slane %v239_v52, %v245_v50 }
  0xbd   : > { %v248_v54 = vmul.f32 %v246_v53, %v235_v51 }
  0xbf   : > { %249 = vst [vmem:[%s177_s6] sm:$0xff] %v248_v54 }
  0xc0   : > { %481 = shalt.err (!%p478_p6)
}
  0xc1   : > { %s482_s26 = scalar_lea.hbm %s705_s16, 128  ;;  %s486_s29 = scalar_lea.hbm %s756_s2, 256 }
  0xc2   : > { %p483_p4 = scmp.ne.s32.totalorder %s705_s16, %s482_s26  ;;  %p487_p1 = scmp.lt.u32.totalorder %s705_s16, %s756_s2 }
  0xc3   : > { %p488_p2 = scmp.lt.u32.totalorder %s486_s29, %s482_s26  ;;  %p490_p8 = scmp.lt.u32.totalorder %s482_s26, %s705_s16 }
  0xc4   : > { %p484_p10 = pnand %p483_p4, %p765_p9 }
  0xc5   : > { %p489_p5 = por %p488_p2, %p487_p1 }
  0xc6   : > { %p485_p12 = pneg %p484_p10 }
  0xc7   : > { %p491_p11 = por %p490_p8, %p489_p5 }
  0xc9   : > { %p492_p0 = pnand %p491_p11, %p485_p12 }
  0xcb   : > { %495 = shalt.err (!%p492_p0)
}
  0xcc   : > { %370 = dma.vmem_to_hbm [thread:$0]  (%p765_p9), %s707_s7, 128, %s705_s16, %s251_s18  }
  0xcd PF: > { %s279_s30 = sand.u32 1, %s530_s9   ;;  %p766_p7 = scmp.ne.s32.totalorder %s761_s24, 0 }
  0xce   : > { %p767_p13 = scmp.ge.s32.totalorder %s550_s14, 2  ;;  %s280_s4 = scalar_lea.sflag [#allocation4], %s279_s30 }
  0xd0   : > { %p377_p3 = pnand %p767_p13, %p766_p7 }
  0xd2   : > { %525 = dma.done.wait (!%p377_p3), %s280_s4, 128  }
  0xd3   : > { %527 = vsyncadd (!%p377_p3), %s280_s4, 4294967168  ;;  %s18_s14 = sadd.s32 1, %s550_s14   ;;  %s768_s9 = smov %s534_s10 }
  0xd4   : > { %p15_p6 = scmp.ge.s32.totalorder %s18_s14, 4   ;;  %s769_s10 = smov %s538_s11 }
  0xd5   : > { %s770_s11 = smov %s627_s23  ;;  %s771_s12 = smov %s546_s13 }
  0xd6   : > { %s772_s13 = smov %s774_s17  ;;  %17 = sbr.rel (!%p15_p6) target bundleno = 6 (0x6), region = 73 }
  0xdd   :  { %285 = vsyncpa [#allocation3], 1 }
  0xde   :  { %287 = vsyncpa [#allocation3 + $0x1], 1 }
  0xdf   :  { %288 = vsyncpa [#allocation4], 1 }
  0xe0   :  { %290 = vsyncpa [#allocation4 + $0x1], 1 }

</bundles_post_ra>
